<compile_context>
chip_gen: v6e
topology: v6e:2x2x1
jax: 0.10.0
libtpu: 0.0.40
codegen_flags: <defaults>
</compile_context>

<pallas_src>
import functools

import numpy as np
import jax
import jax.numpy as jnp
from jax.experimental import pallas as pl
from jax.experimental.pallas import tpu as pltpu


# ---------------------------------------------------------------------------
# Kernels
# ---------------------------------------------------------------------------

def mlp_fused_kernel(x_ref, w1_ref, b1_ref, w2_ref, b2_ref, o_ref):
    """Fast path: full d_hid resident; both matmuls + biases + log_softmax."""
    # x_ref : (TB, D_IN) bf16/f32    w1_ref: (D_IN, D_HID) bf16   b1_ref: (1, D_HID) f32
    # w2_ref: (D_HID, D_OUT) bf16    b2_ref: (1, D_OUT) f32       o_ref : (TB, D_OUT)
    #
    # NOTE: when B % block_b != 0 the padded tail rows of the last x block hold
    # garbage; log_softmax is strictly row-wise and those rows are never
    # written back, so this is safe.  Do not add cross-row reductions here.
    x = x_ref[...].astype(jnp.bfloat16)  # no-op when the producer emits bf16

    # fc1:  h = x @ W1 + b1   (f32 accumulation on the MXU)
    h = jnp.dot(x, w1_ref[...], preferred_element_type=jnp.float32) + b1_ref[...]

    # fc2:  y = h @ W2 + b2
    y = (jnp.dot(h.astype(jnp.bfloat16), w2_ref[...],
                 preferred_element_type=jnp.float32) + b2_ref[...])

    # log_softmax over the last axis (numerically stable; exp/log -> EUP).
    m = jnp.max(y, axis=-1, keepdims=True)
    s = y - m
    lse = jnp.log(jnp.sum(jnp.exp(s), axis=-1, keepdims=True))
    o_ref[...] = (s - lse).astype(o_ref.dtype)


def mlp_ktiled_kernel(x_ref, w1_ref, b1_ref, w2_ref, b2_ref, o_ref, acc_ref):
    """Fallback path: tile over d_hid so large hidden sizes fit v7x's 64 MiB VMEM.

    Accumulates y = sum_k (x @ W1[:, k] + b1[k]) @ W2[k, :] in an f32 VMEM
    scratch; bias b2 + log_softmax applied and stored on the last K step.
    """
    k = pl.program_id(1)

    @pl.when(k == 0)
    def _():
        acc_ref[...] = jnp.zeros_like(acc_ref)

    x = x_ref[...].astype(jnp.bfloat16)
    # Column slab of the hidden activation for this K tile.
    hk = jnp.dot(x, w1_ref[...], preferred_element_type=jnp.float32) + b1_ref[...]
    acc_ref[...] += jnp.dot(hk.astype(jnp.bfloat16), w2_ref[...],
                            preferred_element_type=jnp.float32)

    @pl.when(k == pl.num_programs(1) - 1)
    def _():
        y = acc_ref[...] + b2_ref[...]
        m = jnp.max(y, axis=-1, keepdims=True)
        s = y - m
        lse = jnp.log(jnp.sum(jnp.exp(s), axis=-1, keepdims=True))
        o_ref[...] = (s - lse).astype(o_ref.dtype)


# ---------------------------------------------------------------------------
# Wrapper
# ---------------------------------------------------------------------------

# Resident-weights + intermediates budget above which we switch to the
# d_hid-tiled path.  Sized for v7x's 64 MiB/TC physical VMEM with headroom
# for double buffers and compiler scratch.
_VMEM_BUDGET_BYTES = 40 * 1024 * 1024


@functools.partial(jax.jit, static_argnames=("block_b", "block_k", "out_dtype"))
def mlp_forward(x, w1, b1, w2, b2, *, block_b=128, block_k=None,
                out_dtype=jnp.float32):
    """x: (B, d_in); w1: (d_in, d_hid) bf16; b1: (1, d_hid) f32;
    w2: (d_hid, d_out) bf16; b2: (1, d_out) f32.

    block_b: batch tile (128 keeps >=2 grid steps per v7x core at B=512;
             sweep up to 512-1024 on v5e/v6e).
    block_k: if set (multiple of 128 dividing d_hid) forces the d_hid-tiled
             path; if None it is chosen automatically from a VMEM budget.
    """
    B, d_in = x.shape
    d_in_w, d_hid = w1.shape
    d_hid_w, d_out = w2.shape
    assert d_in == d_in_w and d_hid == d_hid_w

    block_b = min(block_b, B)
    out_itemsize = np.dtype(out_dtype).itemsize

    # ---- static, shape-based path selection (v7x VMEM guard) --------------
    resident_bytes = ((d_in * d_hid + d_hid * d_out) * w1.dtype.itemsize
                      + (d_hid + d_out) * 4)
    streamed_bytes = (2 * block_b * d_in * x.dtype.itemsize      # x double buffer
                      + 2 * block_b * d_out * out_itemsize)      # out double buffer
    interm_bytes = block_b * d_hid * (4 + 2)                     # f32 h + bf16 copy
    if block_k is None and (resident_bytes + streamed_bytes + interm_bytes
                            > _VMEM_BUDGET_BYTES):
        block_k = 512  # TODO(synk): sweep block_k per chip generation.
    if block_k is not None:
        block_k = min(block_k, d_hid)
        assert block_k % 128 == 0 and d_hid % block_k == 0, (
            "block_k must be a multiple of 128 that divides d_hid")

    grid_b = pl.cdiv(B, block_b)
    out_shape = jax.ShapeDtypeStruct((B, d_out), out_dtype)

    flops = 2 * B * (d_in * d_hid + d_hid * d_out)
    transcendentals = B * (d_out + 1)  # exp per logit + log per row
    bytes_accessed = (x.size * x.dtype.itemsize
                      + w1.size * w1.dtype.itemsize
                      + w2.size * w2.dtype.itemsize
                      + (d_hid + d_out) * 4
                      + B * d_out * out_itemsize)
    cost = pl.CostEstimate(flops=flops, transcendentals=transcendentals,
                           bytes_accessed=bytes_accessed)

    # Grid-invariant operands (constant index_map) -> single VMEM buffer.
    resident = pl.Buffered(buffer_count=1)

    if block_k is None:
        # ---- fast path: weights fully resident, grid over batch only ------
        return pl.pallas_call(
            mlp_fused_kernel,
            out_shape=out_shape,
            grid=(grid_b,),
            in_specs=[
                pl.BlockSpec((block_b, d_in), lambda i: (i, 0)),
                pl.BlockSpec((d_in, d_hid), lambda i: (0, 0),
                             pipeline_mode=resident),
                pl.BlockSpec((1, d_hid), lambda i: (0, 0),
                             pipeline_mode=resident),
                pl.BlockSpec((d_hid, d_out), lambda i: (0, 0),
                             pipeline_mode=resident),
                pl.BlockSpec((1, d_out), lambda i: (0, 0),
                             pipeline_mode=resident),
            ],
            out_specs=pl.BlockSpec((block_b, d_out), lambda i: (i, 0)),
            compiler_params=pltpu.CompilerParams(
                # batch axis is independent -> shards across v7x's 2 TCs
                dimension_semantics=("parallel",),
                vmem_limit_bytes=48 * 1024 * 1024,
            ),
            cost_estimate=cost,
        )(x, w1, b1, w2, b2)

    # ---- d_hid-tiled fallback (large hidden sizes / v7x 64 MiB VMEM) ------
    grid_k = d_hid // block_k
    return pl.pallas_call(
        mlp_ktiled_kernel,
        out_shape=out_shape,
        grid=(grid_b, grid_k),
        in_specs=[
            pl.BlockSpec((block_b, d_in), lambda i, k: (i, 0)),
            pl.BlockSpec((d_in, block_k), lambda i, k: (0, k)),
            pl.BlockSpec((1, block_k), lambda i, k: (0, k)),
            pl.BlockSpec((block_k, d_out), lambda i, k: (k, 0)),
            pl.BlockSpec((1, d_out), lambda i, k: (0, 0),
                         pipeline_mode=resident),
        ],
        out_specs=pl.BlockSpec((block_b, d_out), lambda i, k: (i, 0)),
        scratch_shapes=[pltpu.VMEM((block_b, d_out), jnp.float32)],
        compiler_params=pltpu.CompilerParams(
            # reduction axis (d_hid) last and "arbitrary"; batch stays parallel
            dimension_semantics=("parallel", "arbitrary"),
            vmem_limit_bytes=48 * 1024 * 1024,
        ),
        cost_estimate=cost,
    )(x, w1, b1, w2, b2)


# ---------------------------------------------------------------------------
# Params / reference
# ---------------------------------------------------------------------------

def init_params(key, dim_in, dim_hidden, dim_out):
    """nn.Linear-style init (uniform +-1/sqrt(fan_in)).

    Weights are cast to bf16 ONCE here (not per forward call), stored
    transposed vs. PyTorch's [out, in]; biases stay f32 as (1, d) rows.
    """
    k1, k2, k3, k4 = jax.random.split(key, 4)
    lim1 = 1.0 / (dim_in ** 0.5)
    lim2 = 1.0 / (dim_hidden ** 0.5)
    w1_t = jax.random.uniform(k1, (dim_in, dim_hidden), jnp.float32, -lim1, lim1)
    b1 = jax.random.uniform(k2, (dim_hidden,), jnp.float32, -lim1, lim1)
    w2_t = jax.random.uniform(k3, (dim_hidden, dim_out), jnp.float32, -lim2, lim2)
    b2 = jax.random.uniform(k4, (dim_out,), jnp.float32, -lim2, lim2)
    return (w1_t.astype(jnp.bfloat16), b1.reshape(1, dim_hidden),
            w2_t.astype(jnp.bfloat16), b2.reshape(1, dim_out))


def reference_forward(x, w1, b1, w2, b2):
    # Same bf16-input / f32-accumulate numerics as the kernel.
    h = jnp.dot(x.astype(jnp.bfloat16), w1,
                preferred_element_type=jnp.float32) + b1
    y = jnp.dot(h.astype(jnp.bfloat16), w2,
                preferred_element_type=jnp.float32) + b2
    return jax.nn.log_softmax(y, axis=-1)


# ---------------------------------------------------------------------------
# Example / self-test
# ---------------------------------------------------------------------------

if __name__ == "__main__":
    key = jax.random.PRNGKey(0)
    kx, kp = jax.random.split(key)

    # Lane-/MXU-friendly sizes: feature dims multiples of 128 (use multiples
    # of 256 for full MXU occupancy on v6e/v7x when the model allows it).
    batch, dim_in, dim_hidden, dim_out = 512, 128, 256, 128

    # Producer emits bf16 activations directly (no wrapper-side cast pass).
    x = jax.random.normal(kx, (batch, dim_in), jnp.bfloat16)
    w1, b1, w2, b2 = init_params(kp, dim_in, dim_hidden, dim_out)

    ref = reference_forward(x, w1, b1, w2, b2)

    # Fast path: weights resident, grid=(4,) -> >=2 steps per v7x TensorCore.
    out = mlp_forward(x, w1, b1, w2, b2, block_b=128)
    out = jax.block_until_ready(out)
    assert out.shape == (batch, dim_out) and out.dtype == jnp.float32
    assert jnp.allclose(out, ref, atol=2e-2, rtol=2e-2), "fused path mismatch"

    # Force the d_hid-tiled fallback (taken automatically for large d_hid).
    out_kt = mlp_forward(x, w1, b1, w2, b2, block_b=128, block_k=128)
    out_kt = jax.block_until_ready(out_kt)
    assert jnp.allclose(out_kt, ref, atol=2e-2, rtol=2e-2), "k-tiled path mismatch"

    print("KERNEL_OK")
</pallas_src>

<mosaic_0001>
module attributes {stable_mosaic.version = 11 : i64} {
  func.func @mlp_fused_kernel(%arg0: i32, %arg1: memref<128x128xbf16, #tpu.memory_space<vmem>>, %arg2: memref<128x256xbf16, #tpu.memory_space<vmem>>, %arg3: memref<1x256xf32, #tpu.memory_space<vmem>>, %arg4: memref<256x128xbf16, #tpu.memory_space<vmem>>, %arg5: memref<1x128xf32, #tpu.memory_space<vmem>>, %arg6: memref<128x128xf32, #tpu.memory_space<vmem>>) attributes {dimension_semantics = [#tpu.dimension_semantics<parallel>], iteration_bounds = array<i64: 4>, scalar_prefetch = 0 : i64, scratch_operands = 0 : i64, tpu.core_type = #tpu.core_type<tc>, window_params = [{transform_indices = @transform_0, window_bounds = array<i64: 128, 128>}, {pipeline_mode = #tpu.pipeline_mode<synchronous>, transform_indices = @transform_1, window_bounds = array<i64: 128, 256>}, {pipeline_mode = #tpu.pipeline_mode<synchronous>, transform_indices = @transform_2, window_bounds = array<i64: 1, 256>}, {pipeline_mode = #tpu.pipeline_mode<synchronous>, transform_indices = @transform_3, window_bounds = array<i64: 256, 128>}, {pipeline_mode = #tpu.pipeline_mode<synchronous>, transform_indices = @transform_4, window_bounds = array<i64: 1, 128>}, {transform_indices = @transform_5, window_bounds = array<i64: 128, 128>}]} {
    %c0 = arith.constant 0 : index
    %c0_0 = arith.constant 0 : index
    %0 = vector.load %arg1[%c0, %c0_0] : memref<128x128xbf16, #tpu.memory_space<vmem>>, vector<128x128xbf16>
    %c0_1 = arith.constant 0 : index
    %c0_2 = arith.constant 0 : index
    %1 = vector.load %arg2[%c0_1, %c0_2] : memref<128x256xbf16, #tpu.memory_space<vmem>>, vector<128x256xbf16>
    %cst = arith.constant dense<0.000000e+00> : vector<128x256xf32>
    %2 = tpu.matmul %0, %1, %cst {dimension_numbers = #tpu.dot_dimension_numbers<[1], [0], [0], [1], [0, 0, 1, 1], [], []>} : vector<128x128xbf16>, vector<128x256xbf16>, vector<128x256xf32> -> vector<128x256xf32>
    %c0_3 = arith.constant 0 : index
    %c0_4 = arith.constant 0 : index
    %3 = vector.load %arg3[%c0_3, %c0_4] : memref<1x256xf32, #tpu.memory_space<vmem>>, vector<1x256xf32>
    %4 = vector.broadcast %3 : vector<1x256xf32> to vector<128x256xf32>
    %5 = arith.addf %2, %4 : vector<128x256xf32>
    %6 = arith.truncf %5 : vector<128x256xf32> to vector<128x256xbf16>
    %c0_5 = arith.constant 0 : index
    %c0_6 = arith.constant 0 : index
    %7 = vector.load %arg4[%c0_5, %c0_6] : memref<256x128xbf16, #tpu.memory_space<vmem>>, vector<256x128xbf16>
    %cst_7 = arith.constant dense<0.000000e+00> : vector<128x128xf32>
    %8 = tpu.matmul %6, %7, %cst_7 {dimension_numbers = #tpu.dot_dimension_numbers<[1], [0], [0], [1], [0, 0, 1, 1], [], []>} : vector<128x256xbf16>, vector<256x128xbf16>, vector<128x128xf32> -> vector<128x128xf32>
    %c0_8 = arith.constant 0 : index
    %c0_9 = arith.constant 0 : index
    %9 = vector.load %arg5[%c0_8, %c0_9] : memref<1x128xf32, #tpu.memory_space<vmem>>, vector<1x128xf32>
    %10 = vector.broadcast %9 : vector<1x128xf32> to vector<128x128xf32>
    %11 = arith.addf %8, %10 : vector<128x128xf32>
    %cst_10 = arith.constant dense<0xFF800000> : vector<128xf32>
    %12 = vector.multi_reduction <maximumf>, %11, %cst_10 [1] : vector<128x128xf32> to vector<128xf32>
    %13 = vector.shape_cast %12 : vector<128xf32> to vector<128x1xf32>
    %14 = vector.broadcast %13 : vector<128x1xf32> to vector<128x128xf32>
    %15 = arith.subf %11, %14 : vector<128x128xf32>
    %16 = math.exp %15 : vector<128x128xf32>
    %cst_11 = arith.constant dense<0.000000e+00> : vector<128xf32>
    %17 = vector.multi_reduction <add>, %16, %cst_11 [1] : vector<128x128xf32> to vector<128xf32>
    %18 = vector.shape_cast %17 : vector<128xf32> to vector<128x1xf32>
    %19 = math.log %18 : vector<128x1xf32>
    %20 = vector.broadcast %19 : vector<128x1xf32> to vector<128x128xf32>
    %21 = arith.subf %15, %20 : vector<128x128xf32>
    %c0_12 = arith.constant 0 : index
    %c0_13 = arith.constant 0 : index
    %22 = vector.load %arg6[%c0_12, %c0_13] : memref<128x128xf32, #tpu.memory_space<vmem>>, vector<128x128xf32>
    tpu.vector_store %arg6[%c0_12, %c0_13], %21 {strides = array<i32>} : memref<128x128xf32, #tpu.memory_space<vmem>>, vector<128x128xf32>,
    return
  }
  func.func @transform_0(%arg0: i32) -> (i32, i32) {
    %c0_i32 = arith.constant 0 : i32
    %c0_i32_0 = arith.constant 0 : i32
    return %arg0, %c0_i32 : i32, i32
  }
  func.func @transform_1(%arg0: i32) -> (i32, i32) {
    %c0_i32 = arith.constant 0 : i32
    %c0_i32_0 = arith.constant 0 : i32
    %c0_i32_1 = arith.constant 0 : i32
    return %c0_i32, %c0_i32_0 : i32, i32
  }
  func.func @transform_2(%arg0: i32) -> (i32, i32) {
    %c0_i32 = arith.constant 0 : i32
    %c0_i32_0 = arith.constant 0 : i32
    %c0_i32_1 = arith.constant 0 : i32
    return %c0_i32, %c0_i32_0 : i32, i32
  }
  func.func @transform_3(%arg0: i32) -> (i32, i32) {
    %c0_i32 = arith.constant 0 : i32
    %c0_i32_0 = arith.constant 0 : i32
    %c0_i32_1 = arith.constant 0 : i32
    return %c0_i32, %c0_i32_0 : i32, i32
  }
  func.func @transform_4(%arg0: i32) -> (i32, i32) {
    %c0_i32 = arith.constant 0 : i32
    %c0_i32_0 = arith.constant 0 : i32
    %c0_i32_1 = arith.constant 0 : i32
    return %c0_i32, %c0_i32_0 : i32, i32
  }
  func.func @transform_5(%arg0: i32) -> (i32, i32) {
    %c0_i32 = arith.constant 0 : i32
    %c0_i32_0 = arith.constant 0 : i32
    return %arg0, %c0_i32 : i32, i32
  }
}

</mosaic_0001>

<bundles_post_ra>
// kernel: mlp_forward.1
= control target key start
LH: loop header
LB: loop body
LE: loop exit
PB: predicated region body
PF: predicated region fallthrough
CT: control target
= control target key end

     0   :  { %10 = vsyncpa [#allocation3], 0  ;;  %s2010_s0 = inlined_call_operand.hbm [shape: bf16[512,128], index: 0, kind: input, shape index: {}]   ;;  %s2011_s1 = inlined_call_operand.hbm [shape: bf16[128,256], index: 1, kind: input, shape index: {}]   ;;  %s2012_s2 = inlined_call_operand.vmem [shape: f32[1,256], index: 2, kind: input, shape index: {}]   ;;  %s2013_s3 = inlined_call_operand.hbm [shape: bf16[256,128], index: 3, kind: input, shape index: {}]   ;;  %s2014_s4 = inlined_call_operand.vmem [shape: f32[1,128], index: 4, kind: input, shape index: {}]   ;;  %s2015_s5 = inlined_call_operand.hbm [shape: f32[512,128], index: 5, kind: output, shape index: {}]  }
   0x1   :  { %12 = vsyncpa [#allocation3 + $0x1], 0 }
   0x2   :  { %13 = vsyncpa [#allocation6], 0 }
   0x3   :  { %14 = vsyncpa [#allocation4], 0 }
   0x4   :  { %16 = vsyncpa [#allocation4 + $0x1], 0  ;;  %s1592_s18 = smov 0   ;;  %s1594_s19 = smov 0  }
   0x5   :  { %s1596_s20 = smov 0   ;;  %s1598_s21 = smov 0  }
   0x6 LB: > { %s1613_s22 = sadd.s32 4294967295, %s1549_s21   ;;  %s1090_s23 = sadd.s32 4294967294, %s1549_s21   ;;  %s1549_s21 = sphi %s1598_s21, %s2038_s21   ;;  %s1545_s20 = sphi %s1596_s20, %s2037_s20   ;;  %s1541_s19 = sphi %s1594_s19, %s2036_s19   ;;  %s1537_s18 = sphi %s1592_s18, %s2035_s18  }
   0x7   : > { %p42_p0 = scmp.ne.s32.totalorder %s1541_s19, %s1537_s18  ;;  %p2016_p1 = scmp.eq.s32.totalorder %s1613_s22, 0 }
   0x8   : > { %p156_p3 = scmp.eq.s32.totalorder %s1090_s23, 3  ;;  %p1091_p5 = scmp.ge.s32.totalorder %s1549_s21, 1 }
   0x9   : > { %p1622_p4 = por %p2016_p1, %p42_p0  ;;  %p163_p7 = scmp.lt.s32.totalorder %s1549_s21, 5 }
   0xa   : > { %p1627_p6 = por %p156_p3, %p42_p0  ;;  %s1551_s27 = smov [#allocation5]  }
   0xb   : > { %s2021_s24 = scalar_select %p1622_p4, 1, 0 }
   0xc   : > { %s2022_s25 = scalar_select %p1627_p6, 1, 0 }
   0xd   : > { %p1632_p8 = pnand %p1091_p5, %p163_p7  ;;  %s175_s28 = sshll.u32 %s1551_s27, 4  ;;  %s176_s28 = int_to_ptr.vmem [resolvable:$true] %s175_s28 }
   0xe   : > { %s1552_s30 = smov [#allocation7]   ;;  %s1412_s7 = scalar_lea.vmem %s176_s28, 2048 }
   0xf   : > { %s2023_s26 = scalar_select %p1632_p8, 1, 0 }
  0x10   : > { %p1227_p9 = pneg %p1632_p8  ;;  %s191_s6 = sshll.u32 %s1552_s30, 4  ;;  %s192_s6 = int_to_ptr.vmem [resolvable:$true] %s191_s6 }
  0x11   : > { %p1413_p12 = scmp.ne.s32.totalorder %s176_s28, %s1412_s7  ;;  %p1420_p3 = scmp.lt.s32.totalorder %s176_s28, %s176_s28 }
  0x12   : > { %p1640_p10 = pnand %p1227_p9, %p2016_p1  ;;  %p1421_p5 = scmp.lt.s32.totalorder %s1412_s7, %s1412_s7 }
  0x14   : > { %p1403_p11 = pneg %p1640_p10  ;;  %p1422_p7 = por %p1421_p5, %p1420_p3 }
  0x16   : > { %p1415_p13 = pnand %p1413_p12, %p1403_p11 }
  0x18   : > { %p1416_p0 = pneg %p1415_p13 }
  0x1a   : > { %p1423_p9 = pnand %p1422_p7, %p1416_p0 }
  0x1c   : > { %1426 = shalt.err (!%p1423_p9)
}
  0x1d   : > { %s1553_s8 = smov 128   ;;  %s1554_s9 = smov 8  }
  0x1e   : > { %1230 = dma.hbm_to_vmem [thread:$0]  (!%p1640_p10), %s2011_s1, 2048, %s176_s28, [#allocation6], %s1553_s8, %s1553_s8, %s1554_s9  }
  0x1f   : > { %s1438_s12 = scalar_lea.vmem %s192_s6, 2048  ;;  %p1446_p2 = scmp.lt.s32.totalorder %s192_s6, %s192_s6 }
  0x20   : > { %p1439_p1 = scmp.ne.s32.totalorder %s192_s6, %s1438_s12  ;;  %p1447_p6 = scmp.lt.s32.totalorder %s1438_s12, %s1438_s12 }
  0x22   : > { %p1441_p12 = pnand %p1439_p1, %p1403_p11  ;;  %p1448_p3 = por %p1447_p6, %p1446_p2 }
  0x24   : > { %p1442_p13 = pneg %p1441_p12 }
  0x26   : > { %p1449_p0 = pnand %p1448_p3, %p1442_p13 }
  0x28   : > { %1452 = shalt.err (!%p1449_p0)
}
  0x29   : > { %s2017_s13 = smov 64   ;;  %s1556_s14 = smov 4  }
  0x2a   : > { %1233 = dma.hbm_to_vmem [thread:$0]  (!%p1640_p10), %s2013_s3, 2048, %s192_s6, [#allocation6], %s2017_s13, %s2017_s13, %s1556_s14  }
  0x2b   : > { %s1666_s17 = sadd.s32 1, %s1549_s21   ;;  %s29_s27 = sadd.s32 1, %s1545_s20 }
  0x2c   : > { %s26_s23 = ssub.s32 %s1549_s21, %s1666_s17  ;;  %p36_p2 = scmp.ne.s32.totalorder %s1545_s20, %s1541_s19 }
  0x2d   : > { %p27_p1 = scmp.eq.s32.totalorder %s26_s23, 0  ;;  %p37_p6 = scmp.eq.s32.totalorder %s1549_s21, 0 }
  0x2e   : > { %p2025_p5 = scmp.eq.s32.totalorder %s1613_s22, 3  ;;  %p1244_p9 = scmp.lt.s32.totalorder %s1549_s21, 4 }
  0x2f   : > { %s1675_s28 = scalar_select %p27_p1, %s1545_s20, %s29_s27  }
  0x30   : > { %p38_p11 = por %p37_p6, %p36_p2  ;;  %p1679_p7 = por %p2025_p5, %p36_p2 }
  0x31   : > { %s208_s30 = sand.u32 1, %s1545_s20   ;;  %s1149_s6 = sshll.u32 %s1549_s21, 10 }
  0x32   : > { %s2026_s29 = scalar_select %p1679_p7, 1, 0 }
  0x33   : > { %s1095_s7 = sshll.u32 %s208_s30, 6  ;;  %s1689_s10 = scalar_lea.hbm %s2010_s0, %s1149_s6 }
  0x34   : > { %s212_s11 = scalar_lea.vmem [#allocation2], %s1095_s7  ;;  %p1693_p10 = pnand %p1244_p9, %p38_p11 }
  0x35   : > { %s219_s12 = sshll.u32 %s212_s11, 4  ;;  %s1697_s16 = scalar_lea.sflag [#allocation3], %s208_s30  ;;  %s1691_s12 = int_to_ptr.vmem [resolvable:$true] %s219_s12 }
  0x36   : > { %s1453_s23 = scalar_lea.hbm %s1689_s10, 1024  ;;  %p1455_p13 = pneg %p1693_p10 }
  0x37   : > { %p1454_p12 = scmp.ne.s32.totalorder %s1689_s10, %s1453_s23  ;;  %s1458_s7 = scalar_lea.hbm %s2010_s0, 4096 }
  0x38   : > { %p1459_p1 = scmp.lt.s32.totalorder %s1689_s10, %s2010_s0  ;;  %p1460_p2 = scmp.lt.s32.totalorder %s1458_s7, %s1453_s23 }
  0x39   : > { %p1456_p3 = pnand %p1455_p13, %p1454_p12 }
  0x3a   : > { %p1461_p6 = por %p1460_p2, %p1459_p1 }
  0x3b   : > { %p1457_p0 = pneg %p1456_p3 }
  0x3d   : > { %p1462_p11 = pnand %p1461_p6, %p1457_p0 }
  0x3f   : > { %1465 = shalt.err (!%p1462_p11)
}
  0x40   : > { %s1466_s30 = scalar_lea.vmem %s1691_s12, 1024  ;;  %s1557_s11 = smov [#allocation2]  }
  0x41   : > { %p1467_p5 = scmp.ne.s32.totalorder %s1691_s12, %s1466_s30  ;;  %s1471_s13 = sshll.u32 %s1557_s11, 4  ;;  %s1472_s13 = int_to_ptr.vmem [resolvable:$false] %s1471_s13 }
  0x42   : > { %s1473_s27 = scalar_lea.vmem %s1472_s13, 2048  ;;  %p1474_p3 = scmp.lt.s32.totalorder %s1691_s12, %s1472_s13 }
  0x43   : > { %p1469_p9 = pnand %p1467_p5, %p1455_p13  ;;  %p1475_p7 = scmp.lt.s32.totalorder %s1473_s27, %s1466_s30 }
  0x45   : > { %p1470_p12 = pneg %p1469_p9  ;;  %p1476_p4 = por %p1475_p7, %p1474_p3 }
  0x47   : > { %p1477_p8 = pnand %p1476_p4, %p1470_p12 }
  0x49   : > { %1480 = shalt.err (!%p1477_p8)
}
  0x4a   : > { %s2028_s23 = smov 64   ;;  %p2029_p13 = scmp.ne.s32.totalorder %s2023_s26, 0 }
  0x4b   : > { %1237 = dma.hbm_to_vmem [thread:$0]  (!%p1693_p10), %s1689_s10, 1024, %s1691_s12, %s1697_s16, %s2028_s23, %s2028_s23, %s1556_s14  }
  0x4c   : > { %231 = sbr.rel (%p2029_p13) target bundleno = 907 (0x38b), region = 40  ;;  %s1724_s6 = sand.u32 (!%p2029_p13), 1, %s1541_s19  }
  0x4d   : > { %s1099_s13 = sshll.u32 (!%p2029_p13), %s1724_s6, 6  ;;  %s234_s7 = scalar_lea.sflag (!%p2029_p13), [#allocation3], %s1724_s6 }
  0x4e   : > { %s1728_s8 = scalar_lea.vmem (!%p2029_p13), [#allocation2], %s1099_s13  ;;  %p2030_p4 = scmp.ne.s32.totalorder (!%p2029_p13), %s2021_s24, 0 }
  0x51   : > { %1524 = dma.done.wait (%p2030_p4), %s234_s7, 1024  }
  0x52   : > { %1526 = vsyncadd (%p2030_p4), %s234_s7, 4294966272  ;;  %p2031_p8 = scmp.eq.s32.totalorder %s1613_s22, 0 }
  0x54   : > { %1528 = dma.done.wait (%p2031_p8), [#allocation6], 4096   ;;  %p2032_p7 = pmov %p2031_p8 }
  0x55   : > { %v1558_v0 = vmov 0   ;;  %v1289_v1 = vld [vmem:[#allocation5 + $0x74] ss:$8 sps:$4 sm:$0xff]   ;;  %v1291_v2 = vld [vmem:[#allocation5 + $0x70] ss:$8 sps:$4 sm:$0xff]   ;;  %v1325_v19 = vld [vmem:[#allocation7 + $0x68] sm:$0xff]   ;;  %v309_v41 = vlaneseq }
  0x56   : > { %1530 = vsyncadd (%p2032_p7), [#allocation6], 4294963200  ;;  %479 = vmatprep.mubr.bf16.mxu0 %v1558_v0  ;;  %447 = vmatprep.subr.bf16.mxu0 %v1289_v1  ;;  %v1292_v3 = vld [vmem:[#allocation5 + $0x64] ss:$8 sps:$4 sm:$0xff]   ;;  %v1294_v4 = vld [vmem:[#allocation5 + $0x60] ss:$8 sps:$4 sm:$0xff]  }
  0x57   : > { %448 = vmatpush1.bf16.msra.mxu0 %v1291_v2  ;;  %v1295_v5 = vld [vmem:[#allocation5 + $0x54] ss:$8 sps:$4 sm:$0xff]   ;;  %v1297_v6 = vld [vmem:[#allocation5 + $0x50] ss:$8 sps:$4 sm:$0xff]   ;;  %v1298_v7 = vld [vmem:[#allocation5 + $0x44] ss:$8 sps:$4 sm:$0xff]  }
  0x58   : > { %449 = vmatprep.subr.bf16.mxu0 %v1292_v3  ;;  %v1300_v8 = vld [vmem:[#allocation5 + $0x40] ss:$8 sps:$4 sm:$0xff]   ;;  %v1301_v9 = vld [vmem:[#allocation5 + $0x34] ss:$8 sps:$4 sm:$0xff]   ;;  %v1303_v10 = vld [vmem:[#allocation5 + $0x30] ss:$8 sps:$4 sm:$0xff]  }
  0x59   : > { %v1304_v11 = vld [vmem:[#allocation5 + $0x24] ss:$8 sps:$4 sm:$0xff]   ;;  %v1306_v12 = vld [vmem:[#allocation5 + $0x20] ss:$8 sps:$4 sm:$0xff]   ;;  %v1307_v13 = vld [vmem:[#allocation5 + $0x14] ss:$8 sps:$4 sm:$0xff]  }
  0x5a   : > { %v1321_v14 = vld [vmem:[#allocation7 + $0x78] sm:$0xff]   ;;  %v1323_v17 = vld [vmem:[#allocation7 + $0x70] sm:$0xff]   ;;  %v1310_v20 = vld [vmem:[#allocation5 + $0x4] ss:$8 sps:$4 sm:$0xff]   ;;  %v310_v42 = vshrl.u32 %v309_v41, 7  ;;  %s1102_s12 = sshll.u32 %s1724_s6, 7 }
  0x5b   : > { %450 = vmatpush1.bf16.msra.mxu0 %v1294_v4  ;;  %v1322_v15 = vld [vmem:[#allocation7 + $0x38] sm:$0xff]   ;;  %1151 = vmatprep.subr.bf16.mxu1 %v1321_v14  ;;  %v1324_v18 = vld [vmem:[#allocation7 + $0x30] sm:$0xff]   ;;  %v1312_v21 = vld [vmem:[#allocation5] ss:$8 sps:$4 sm:$0xff]   ;;  %s1928_s15 = scalar_lea.vmem [#allocation8], %s1102_s12  ;;  %s1150_s16 = sshll.u32 %s1613_s22, 11 }
  0x5c   : > { %451 = vmatprep.subr.bf16.mxu0 %v1295_v5  ;;  %v1309_v16 = vld [vmem:[#allocation5 + $0x10] ss:$8 sps:$4 sm:$0xff]   ;;  %1152 = vmatpush3.bf16.msra.mxu1 %v1322_v15  ;;  %v1326_v22 = vld [vmem:[#allocation7 + $0x28] sm:$0xff]   ;;  %v1327_v23 = vld [vmem:[#allocation7 + $0x60] sm:$0xff]   ;;  %v315_v43 = vsub.s32 1, %v310_v42  ;;  %v311_v44 = vsub.s32 0, %v310_v42  ;;  %s1964_s27 = scalar_lea.hbm %s2015_s5, %s1150_s16 }
  0x5d   : > { %1153 = vmatprep.subr.bf16.mxu1 %v1323_v17  ;;  %v1313_v24 = vld [vmem:[%s1728_s8] sm:$0xff]   ;;  %v1329_v26 = vld [vmem:[#allocation7 + $0x58] sm:$0xff]   ;;  %v1314_v28 = vld [vmem:[%s1728_s8 + $0x8] sm:$0xff]   ;;  %s998_s9 = sshll.u32 %s1928_s15, 4  ;;  %s985_s23 = scalar_lea.sflag [#allocation4], %s1724_s6  ;;  %s1966_s9 = int_to_ptr.vmem [resolvable:$true] %s998_s9 }
  0x5e   : > { %v1328_v25 = vld [vmem:[#allocation7 + $0x20] sm:$0xff]   ;;  %v1330_v27 = vld [vmem:[#allocation7 + $0x18] sm:$0xff]   ;;  %v1315_v29 = vld [vmem:[%s1728_s8 + $0x10] sm:$0xff]   ;;  %s1481_s13 = scalar_lea.vmem %s1966_s9, 2048  ;;  %p2033_p0 = scmp.ne.s32.totalorder %s2026_s29, 0 }
  0x5f   : > { %452 = vmatpush1.bf16.msra.mxu0 %v1297_v6  ;;  %v1316_v30 = vld [vmem:[%s1728_s8 + $0x18] sm:$0xff]   ;;  %v1317_v31 = vld [vmem:[%s1728_s8 + $0x20] sm:$0xff]   ;;  %v1318_v32 = vld [vmem:[%s1728_s8 + $0x28] sm:$0xff]   ;;  %p1482_p10 = scmp.ne.s32.totalorder %s1966_s9, %s1481_s13  ;;  %s1559_s22 = smov [#allocation8]  }
  0x60   : > { %453 = vmatprep.subr.bf16.mxu0 %v1298_v7  ;;  %1154 = vmatpush3.bf16.msra.mxu1 %v1324_v18  ;;  %v1319_v33 = vld [vmem:[%s1728_s8 + $0x30] sm:$0xff]   ;;  %v1320_v34 = vld [vmem:[%s1728_s8 + $0x38] sm:$0xff]   ;;  %v1333_v37 = vld [vmem:[#allocation7 + $0x48] sm:$0xff]   ;;  %s1485_s7 = sshll.u32 %s1559_s22, 4  ;;  %s1486_s7 = int_to_ptr.vmem [resolvable:$false] %s1485_s7 }
  0x61   : > { %1155 = vmatprep.subr.bf16.mxu1 %v1325_v19  ;;  %v1331_v35 = vld [vmem:[#allocation7 + $0x50] sm:$0xff]   ;;  %v1334_v38 = vld [vmem:[#allocation7 + $0x8] sm:$0xff]   ;;  %v1335_v39 = vld [vmem:[#allocation7 + $0x40] sm:$0xff]   ;;  %p1483_p1 = pnand %p1482_p10, %p2033_p0  ;;  %s1487_s8 = scalar_lea.vmem %s1486_s7, 4096 }
  0x62   : > { %v1332_v36 = vld [vmem:[#allocation7 + $0x10] sm:$0xff]   ;;  %v1336_v40 = vld [vmem:[#allocation7] sm:$0xff]   ;;  %p1488_p6 = scmp.lt.s32.totalorder %s1966_s9, %s1486_s7  ;;  %p1489_p11 = scmp.lt.s32.totalorder %s1487_s8, %s1481_s13 }
  0x63   : > { %454 = vmatpush1.bf16.msra.mxu0 %v1300_v8  ;;  %v307_v46 = vld [vmem:[%s2012_s2] sm:$0x3]  ;;  %p1484_p2 = pneg %p1483_p1 }
  0x64   : > { %455 = vmatprep.subr.bf16.mxu0 %v1301_v9  ;;  %1156 = vmatpush3.bf16.msra.mxu1 %v1326_v22  ;;  %v1757_v48 = vrot.slane %v307_v46, %v315_v43  ;;  %v1759_v49 = vrot.slane %v307_v46, %v311_v44  ;;  %p1490_p5 = por %p1489_p11, %p1488_p6 }
  0x65   : > { %1157 = vmatprep.subr.bf16.mxu1 %v1327_v23 }
  0x66   : > { %p1491_p9 = pnand %p1490_p5, %p1484_p2 }
  0x67   : > { %456 = vmatpush1.bf16.msra.mxu0 %v1303_v10 }
  0x68   : > { %457 = vmatprep.subr.bf16.mxu0 %v1304_v11  ;;  %1158 = vmatpush3.bf16.msra.mxu1 %v1328_v25 }
  0x69   : > { %1159 = vmatprep.subr.bf16.mxu1 %v1329_v26 }
  0x6b   : > { %458 = vmatpush1.bf16.msra.mxu0 %v1306_v12 }
  0x6c   : > { %459 = vmatprep.subr.bf16.mxu0 %v1307_v13  ;;  %1160 = vmatpush3.bf16.msra.mxu1 %v1330_v27 }
  0x6d   : > { %1161 = vmatprep.subr.bf16.mxu1 %v1331_v35 }
  0x6f   : > { %460 = vmatpush1.bf16.msra.mxu0 %v1309_v16 }
  0x70   : > { %461 = vmatprep.subr.bf16.mxu0 %v1310_v20  ;;  %1162 = vmatpush3.bf16.msra.mxu1 %v1332_v36 }
  0x71   : > { %1163 = vmatprep.subr.bf16.mxu1 %v1333_v37 }
  0x73   : > { %462 = vmatpush1.bf16.msra.mxu0 %v1312_v21 }
  0x74   : > { %1164 = vmatpush3.bf16.msra.mxu1 %v1334_v38 }
  0x75   : > { %1165 = vmatprep.subr.bf16.mxu1 %v1335_v39 }
  0x76   : > { %480 = vmatmul.mubr.bf16.vlgmr.msra.gmra.mxu0 %v1313_v24 }
  0x77   : > { %489 = vmatprep.mubr.bf16.mxu0 %v1558_v0 }
  0x78   : > { %1166 = vmatpush3.bf16.msra.mxu1 %v1336_v40 }
  0x7e   : > { %490 = vmatmul.mubr.bf16.gmra.mxu0 %v1314_v28 }
  0x7f   : > { %499 = vmatprep.mubr.bf16.mxu0 %v1558_v0 }
  0x86   : > { %500 = vmatmul.mubr.bf16.gmra.mxu0 %v1315_v29 }
  0x87   : > { %509 = vmatprep.mubr.bf16.mxu0 %v1558_v0 }
  0x8e   : > { %510 = vmatmul.mubr.bf16.gmra.mxu0 %v1316_v30 }
  0x8f   : > { %519 = vmatprep.mubr.bf16.mxu0 %v1558_v0 }
  0x96   : > { %520 = vmatmul.mubr.bf16.gmra.mxu0 %v1317_v31 }
  0x97   : > { %529 = vmatprep.mubr.bf16.mxu0 %v1558_v0 }
  0x9e   : > { %530 = vmatmul.mubr.bf16.gmra.mxu0 %v1318_v32 }
  0x9f   : > { %539 = vmatprep.mubr.bf16.mxu0 %v1558_v0 }
  0xa6   : > { %540 = vmatmul.mubr.bf16.gmra.mxu0 %v1319_v33 }
  0xa7   : > { %549 = vmatprep.mubr.bf16.mxu0 %v1558_v0 }
  0xae   : > { %550 = vmatmul.mubr.bf16.gmra.mxu0 %v1320_v34 }
 0x136   : > { %v481_v45 = vpop.f32.mrf.mxu0 }
 0x137   : > { %v482_v55 = vadd.f32 %v481_v45, %v1759_v49 }
 0x138   : > { %v483_v47 = vpop.f32.mrf.mxu0 }
 0x139   : > { %v484_v53 = vadd.f32 %v483_v47, %v1757_v48 }
 0x13a   : > { %v485_v50 = vpop.f32.mrf.mxu0 }
 0x13b   : > { %v486_v51 = vadd.f32 %v485_v50, %v1759_v49 }
 0x13c   : > { %v487_v52 = vpop.f32.mrf.mxu0 }
 0x13d   : > { %v488_v54 = vadd.f32 %v487_v52, %v1757_v48  ;;  %v560_v58 = vpack.c.bf16 %v486_v51, %v482_v55 }
 0x13e   : > { %v491_v56 = vpop.f32.mrf.mxu0 }
 0x13f   : > { %v561_v57 = vpack.c.bf16 %v488_v54, %v484_v53  ;;  %v492_v1 = vadd.f32 %v491_v56, %v1759_v49 }
 0x140   : > { %v493_v59 = vpop.f32.mrf.mxu0 }
 0x141   : > { %743 = vmatprep.mubr.bf16.mxu1 %v561_v57  ;;  %v494_v63 = vadd.f32 %v493_v59, %v1757_v48 }
 0x142   : > { %v495_v60 = vpop.f32.mrf.mxu0  ;;  %744 = vmatmul.mubr.bf16.vlgmr.msra.gmra.mxu1 %v560_v58 }
 0x143   : > { %v496_v61 = vadd.f32 %v495_v60, %v1759_v49 }
 0x144   : > { %v497_v62 = vpop.f32.mrf.mxu0 }
 0x145   : > { %v498_v0 = vadd.f32 %v497_v62, %v1757_v48  ;;  %v562_v4 = vpack.c.bf16 %v496_v61, %v492_v1 }
 0x146   : > { %v501_v2 = vpop.f32.mrf.mxu0 }
 0x147   : > { %v563_v3 = vpack.c.bf16 %v498_v0, %v494_v63  ;;  %v502_v11 = vadd.f32 %v501_v2, %v1759_v49 }
 0x148   : > { %v503_v5 = vpop.f32.mrf.mxu0 }
 0x149   : > { %751 = vmatprep.mubr.bf16.mxu1 %v563_v3  ;;  %v504_v9 = vadd.f32 %v503_v5, %v1757_v48 }
 0x14a   : > { %v505_v6 = vpop.f32.mrf.mxu0  ;;  %752 = vmatmul.mubr.bf16.gmra.mxu1 %v562_v4  ;;  %v1796_v4 = vld [vmem:[%s2014_s4] ss:$0 sm:$0xff] }
 0x14b   : > { %v506_v7 = vadd.f32 %v505_v6, %v1759_v49 }
 0x14c   : > { %v507_v8 = vpop.f32.mrf.mxu0 }
 0x14d   : > { %v508_v10 = vadd.f32 %v507_v8, %v1757_v48  ;;  %v564_v14 = vpack.c.bf16 %v506_v7, %v502_v11 }
 0x14e   : > { %v511_v12 = vpop.f32.mrf.mxu0 }
 0x14f   : > { %v565_v13 = vpack.c.bf16 %v508_v10, %v504_v9  ;;  %v512_v21 = vadd.f32 %v511_v12, %v1759_v49 }
 0x150   : > { %v513_v15 = vpop.f32.mrf.mxu0 }
 0x151   : > { %759 = vmatprep.mubr.bf16.mxu1 %v565_v13  ;;  %v514_v19 = vadd.f32 %v513_v15, %v1757_v48 }
 0x152   : > { %v515_v16 = vpop.f32.mrf.mxu0  ;;  %760 = vmatmul.mubr.bf16.gmra.mxu1 %v564_v14 }
 0x153   : > { %v516_v17 = vadd.f32 %v515_v16, %v1759_v49 }
 0x154   : > { %v517_v18 = vpop.f32.mrf.mxu0 }
 0x155   : > { %v518_v20 = vadd.f32 %v517_v18, %v1757_v48  ;;  %v566_v24 = vpack.c.bf16 %v516_v17, %v512_v21 }
 0x156   : > { %v521_v22 = vpop.f32.mrf.mxu0 }
 0x157   : > { %v567_v23 = vpack.c.bf16 %v518_v20, %v514_v19  ;;  %v522_v31 = vadd.f32 %v521_v22, %v1759_v49 }
 0x158   : > { %v523_v25 = vpop.f32.mrf.mxu0 }
 0x159   : > { %767 = vmatprep.mubr.bf16.mxu1 %v567_v23  ;;  %v524_v29 = vadd.f32 %v523_v25, %v1757_v48 }
 0x15a   : > { %v525_v26 = vpop.f32.mrf.mxu0  ;;  %768 = vmatmul.mubr.bf16.gmra.mxu1 %v566_v24 }
 0x15b   : > { %v526_v27 = vadd.f32 %v525_v26, %v1759_v49 }
 0x15c   : > { %v527_v28 = vpop.f32.mrf.mxu0 }
 0x15d   : > { %v528_v30 = vadd.f32 %v527_v28, %v1757_v48  ;;  %v568_v34 = vpack.c.bf16 %v526_v27, %v522_v31 }
 0x15e   : > { %v531_v32 = vpop.f32.mrf.mxu0 }
 0x15f   : > { %v569_v33 = vpack.c.bf16 %v528_v30, %v524_v29  ;;  %v532_v41 = vadd.f32 %v531_v32, %v1759_v49 }
 0x160   : > { %v533_v35 = vpop.f32.mrf.mxu0 }
 0x161   : > { %775 = vmatprep.mubr.bf16.mxu1 %v569_v33  ;;  %v534_v39 = vadd.f32 %v533_v35, %v1757_v48 }
 0x162   : > { %v535_v36 = vpop.f32.mrf.mxu0  ;;  %776 = vmatmul.mubr.bf16.gmra.mxu1 %v568_v34 }
 0x163   : > { %v536_v37 = vadd.f32 %v535_v36, %v1759_v49 }
 0x164   : > { %v537_v38 = vpop.f32.mrf.mxu0 }
 0x165   : > { %v538_v40 = vadd.f32 %v537_v38, %v1757_v48  ;;  %v570_v44 = vpack.c.bf16 %v536_v37, %v532_v41 }
 0x166   : > { %v541_v42 = vpop.f32.mrf.mxu0 }
 0x167   : > { %v571_v43 = vpack.c.bf16 %v538_v40, %v534_v39  ;;  %v542_v53 = vadd.f32 %v541_v42, %v1759_v49 }
 0x168   : > { %v543_v45 = vpop.f32.mrf.mxu0 }
 0x169   : > { %783 = vmatprep.mubr.bf16.mxu1 %v571_v43  ;;  %v544_v51 = vadd.f32 %v543_v45, %v1757_v48 }
 0x16a   : > { %v545_v46 = vpop.f32.mrf.mxu0  ;;  %784 = vmatmul.mubr.bf16.gmra.mxu1 %v570_v44 }
 0x16b   : > { %v546_v47 = vadd.f32 %v545_v46, %v1759_v49 }
 0x16c   : > { %v547_v50 = vpop.f32.mrf.mxu0 }
 0x16d   : > { %v548_v52 = vadd.f32 %v547_v50, %v1757_v48  ;;  %v572_v56 = vpack.c.bf16 %v546_v47, %v542_v53 }
 0x16e   : > { %v551_v54 = vpop.f32.mrf.mxu0 }
 0x16f   : > { %v573_v55 = vpack.c.bf16 %v548_v52, %v544_v51  ;;  %v552_v63 = vadd.f32 %v551_v54, %v1759_v49 }
 0x170   : > { %v553_v57 = vpop.f32.mrf.mxu0 }
 0x171   : > { %791 = vmatprep.mubr.bf16.mxu1 %v573_v55  ;;  %v554_v61 = vadd.f32 %v553_v57, %v1757_v48 }
 0x172   : > { %v555_v58 = vpop.f32.mrf.mxu0  ;;  %792 = vmatmul.mubr.bf16.gmra.mxu1 %v572_v56 }
 0x173   : > { %v556_v59 = vadd.f32 %v555_v58, %v1759_v49 }
 0x174   : > { %v557_v60 = vpop.f32.mrf.mxu0 }
 0x175   : > { %v558_v62 = vadd.f32 %v557_v60, %v1757_v48  ;;  %v574_v1 = vpack.c.bf16 %v556_v59, %v552_v63 }
 0x177   : > { %v575_v0 = vpack.c.bf16 %v558_v62, %v554_v61 }
 0x179   : > { %799 = vmatprep.mubr.bf16.mxu1 %v575_v0 }
 0x17a   : > { %800 = vmatmul.mubr.bf16.gmra.mxu1 %v574_v1 }
 0x202   : > { %v1167_v2 = vpop.f32.mrf.mxu1 }
 0x204   : > { %v1168_v3 = vpop.f32.mrf.mxu1 }
 0x205   : > { %v1169_v5 = vadd.f32 %v1168_v3, %v1167_v2 }
 0x206   : > { %v1170_v6 = vpop.f32.mrf.mxu1 }
 0x207   : > { %v1799_v7 = vadd.f32 %v1169_v5, %v1796_v4 }
 0x208   : > { %v1171_v8 = vpop.f32.mrf.mxu1 }
 0x209   : > { %v1172_v48 = vadd.f32 %v1171_v8, %v1170_v6  ;;  %808 = vmax.xlane.f32.xlu0 %v1799_v7 }
 0x20a   : > { %v1173_v49 = vpop.f32.mrf.mxu1 }
 0x20b   : > { %v1803_v9 = vadd.f32 %v1172_v48, %v1796_v4 }
 0x20c   : > { %v1174_v10 = vpop.f32.mrf.mxu1 }
 0x20d   : > { %v1175_v11 = vadd.f32 %v1174_v10, %v1173_v49  ;;  %810 = vmax.xlane.f32.xlu0 %v1803_v9 }
 0x20e   : > { %v1176_v12 = vpop.f32.mrf.mxu1 }
 0x20f   : > { %v1807_v13 = vadd.f32 %v1175_v11, %v1796_v4 }
 0x210   : > { %v1177_v14 = vpop.f32.mrf.mxu1 }
 0x211   : > { %v1178_v15 = vadd.f32 %v1177_v14, %v1176_v12  ;;  %812 = vmax.xlane.f32.xlu1 %v1807_v13 }
 0x212   : > { %v1179_v16 = vpop.f32.mrf.mxu1 }
 0x213   : > { %v1811_v17 = vadd.f32 %v1178_v15, %v1796_v4 }
 0x214   : > { %v1180_v18 = vpop.f32.mrf.mxu1 }
 0x215   : > { %v1181_v19 = vadd.f32 %v1180_v18, %v1179_v16  ;;  %814 = vmax.xlane.f32.xlu1 %v1811_v17 }
 0x216   : > { %v1182_v20 = vpop.f32.mrf.mxu1 }
 0x217   : > { %v1815_v21 = vadd.f32 %v1181_v19, %v1796_v4 }
 0x218   : > { %v1183_v22 = vpop.f32.mrf.mxu1 }
 0x219   : > { %v1184_v23 = vadd.f32 %v1183_v22, %v1182_v20  ;;  %816 = vmax.xlane.f32.xlu0 %v1815_v21 }
 0x21a   : > { %v1185_v24 = vpop.f32.mrf.mxu1 }
 0x21b   : > { %v1819_v25 = vadd.f32 %v1184_v23, %v1796_v4 }
 0x21c   : > { %v1186_v26 = vpop.f32.mrf.mxu1 }
 0x21d   : > { %v1187_v27 = vadd.f32 %v1186_v26, %v1185_v24  ;;  %818 = vmax.xlane.f32.xlu1 %v1819_v25 }
 0x21e   : > { %v1188_v28 = vpop.f32.mrf.mxu1 }
 0x21f   : > { %v1823_v29 = vadd.f32 %v1187_v27, %v1796_v4 }
 0x220   : > { %v1189_v30 = vpop.f32.mrf.mxu1 }
 0x221   : > { %v1190_v31 = vadd.f32 %v1189_v30, %v1188_v28  ;;  %820 = vmax.xlane.f32.xlu0 %v1823_v29 }
 0x222   : > { %v1191_v32 = vpop.f32.mrf.mxu1 }
 0x223   : > { %v1827_v33 = vadd.f32 %v1190_v31, %v1796_v4 }
 0x224   : > { %v1192_v34 = vpop.f32.mrf.mxu1 }
 0x225   : > { %v1193_v35 = vadd.f32 %v1192_v34, %v1191_v32  ;;  %822 = vmax.xlane.f32.xlu1 %v1827_v33 }
 0x226   : > { %v1194_v36 = vpop.f32.mrf.mxu1 }
 0x227   : > { %v1831_v37 = vadd.f32 %v1193_v35, %v1796_v4 }
 0x228   : > { %v1195_v38 = vpop.f32.mrf.mxu1 }
 0x229   : > { %v1196_v39 = vadd.f32 %v1195_v38, %v1194_v36  ;;  %824 = vmax.xlane.f32.xlu0 %v1831_v37 }
 0x22a   : > { %v1197_v40 = vpop.f32.mrf.mxu1 }
 0x22b   : > { %v1835_v41 = vadd.f32 %v1196_v39, %v1796_v4 }
 0x22c   : > { %v1198_v42 = vpop.f32.mrf.mxu1 }
 0x22d   : > { %v1199_v43 = vadd.f32 %v1198_v42, %v1197_v40  ;;  %826 = vmax.xlane.f32.xlu1 %v1835_v41 }
 0x22e   : > { %v1200_v44 = vpop.f32.mrf.mxu1 }
 0x22f   : > { %v1839_v45 = vadd.f32 %v1199_v43, %v1796_v4 }
 0x230   : > { %v1201_v46 = vpop.f32.mrf.mxu1 }
 0x231   : > { %v1202_v47 = vadd.f32 %v1201_v46, %v1200_v44  ;;  %828 = vmax.xlane.f32.xlu0 %v1839_v45 }
 0x232   : > { %v1203_v50 = vpop.f32.mrf.mxu1 }
 0x233   : > { %v1843_v51 = vadd.f32 %v1202_v47, %v1796_v4 }
 0x234   : > { %v1204_v52 = vpop.f32.mrf.mxu1 }
 0x235   : > { %v1205_v53 = vadd.f32 %v1204_v52, %v1203_v50  ;;  %830 = vmax.xlane.f32.xlu1 %v1843_v51 }
 0x236   : > { %v1206_v54 = vpop.f32.mrf.mxu1 }
 0x237   : > { %v1847_v55 = vadd.f32 %v1205_v53, %v1796_v4 }
 0x238   : > { %v1207_v56 = vpop.f32.mrf.mxu1 }
 0x239   : > { %v1208_v57 = vadd.f32 %v1207_v56, %v1206_v54  ;;  %832 = vmax.xlane.f32.xlu0 %v1847_v55 }
 0x23a   : > { %v1209_v58 = vpop.f32.mrf.mxu1 }
 0x23b   : > { %v1851_v59 = vadd.f32 %v1208_v57, %v1796_v4 }
 0x23c   : > { %v1210_v60 = vpop.f32.mrf.mxu1 }
 0x23d   : > { %v1211_v61 = vadd.f32 %v1210_v60, %v1209_v58  ;;  %834 = vmax.xlane.f32.xlu1 %v1851_v59 }
 0x23e   : > { %v1212_v62 = vpop.f32.mrf.mxu1 }
 0x23f   : > { %v1855_v63 = vadd.f32 %v1211_v61, %v1796_v4 }
 0x240   : > { %v1213_v0 = vpop.f32.mrf.mxu1 }
 0x241   : > { %v1214_v1 = vadd.f32 %v1213_v0, %v1212_v62  ;;  %836 = vmax.xlane.f32.xlu0 %v1855_v63 }
 0x243   : > { %v1859_v2 = vadd.f32 %v1214_v1, %v1796_v4 }
 0x245   : > { %838 = vmax.xlane.f32.xlu1 %v1859_v2 }
 0x292   : > { %v809_v3 = vpop.xlane.xlu0 %808 }
 0x293   : > { %v1863_v5 = vsub.f32 %v1799_v7, %v809_v3 }
 0x295   : > { %v856_v6 = vmul.f32 1.442695, %v1863_v5 }
 0x296   : > { %v811_v8 = vpop.xlane.xlu0 %810 }
 0x297   : > { %1337 = vpow2.f32 %v856_v6  ;;  %v1867_v48 = vsub.f32 %v1803_v9, %v811_v8 }
 0x299   : > { %v858_v49 = vmul.f32 1.442695, %v1867_v48 }
 0x29a   : > { %v813_v10 = vpop.xlane.xlu1 %812 }
 0x29b   : > { %1339 = vpow2.f32 %v858_v49  ;;  %v1871_v4 = vsub.f32 %v1807_v13, %v813_v10 }
 0x29d   : > { %v860_v11 = vmul.f32 1.442695, %v1871_v4 }
 0x29e   : > { %v815_v12 = vpop.xlane.xlu1 %814 }
 0x29f   : > { %1341 = vpow2.f32 %v860_v11  ;;  %v1875_v7 = vsub.f32 %v1811_v17, %v815_v12 }
 0x2a1   : > { %v862_v14 = vmul.f32 1.442695, %v1875_v7 }
 0x2a2   : > { %v817_v15 = vpop.xlane.xlu0 %816 }
 0x2a3   : > { %1343 = vpow2.f32 %v862_v14  ;;  %v1879_v9 = vsub.f32 %v1815_v21, %v817_v15 }
 0x2a4   : > { %v1338_v16 = vpop.eup %1337 }
 0x2a5   : > { %v864_v18 = vmul.f32 1.442695, %v1879_v9  ;;  %888 = vadd.xlane.f32.xlu0 %v1338_v16 }
 0x2a6   : > { %v819_v13 = vpop.xlane.xlu1 %818 }
 0x2a7   : > { %1345 = vpow2.f32 %v864_v18  ;;  %v1883_v19 = vsub.f32 %v1819_v25, %v819_v13 }
 0x2a8   : > { %v1340_v20 = vpop.eup %1339 }
 0x2a9   : > { %v866_v17 = vmul.f32 1.442695, %v1883_v19  ;;  %890 = vadd.xlane.f32.xlu1 %v1340_v20 }
 0x2aa   : > { %v821_v22 = vpop.xlane.xlu0 %820 }
 0x2ab   : > { %1347 = vpow2.f32 %v866_v17  ;;  %v1887_v23 = vsub.f32 %v1823_v29, %v821_v22 }
 0x2ac   : > { %v1342_v21 = vpop.eup %1341 }
 0x2ad   : > { %v868_v24 = vmul.f32 1.442695, %v1887_v23  ;;  %892 = vadd.xlane.f32.xlu0 %v1342_v21 }
 0x2ae   : > { %v823_v26 = vpop.xlane.xlu1 %822 }
 0x2af   : > { %1349 = vpow2.f32 %v868_v24  ;;  %v1891_v27 = vsub.f32 %v1827_v33, %v823_v26 }
 0x2b0   : > { %v1344_v25 = vpop.eup %1343 }
 0x2b1   : > { %v870_v28 = vmul.f32 1.442695, %v1891_v27  ;;  %894 = vadd.xlane.f32.xlu1 %v1344_v25 }
 0x2b2   : > { %v825_v30 = vpop.xlane.xlu0 %824 }
 0x2b3   : > { %1351 = vpow2.f32 %v870_v28  ;;  %v1895_v31 = vsub.f32 %v1831_v37, %v825_v30 }
 0x2b4   : > { %v1346_v29 = vpop.eup %1345 }
 0x2b5   : > { %v872_v32 = vmul.f32 1.442695, %v1895_v31  ;;  %896 = vadd.xlane.f32.xlu0 %v1346_v29 }
 0x2b6   : > { %v827_v34 = vpop.xlane.xlu1 %826 }
 0x2b7   : > { %1353 = vpow2.f32 %v872_v32  ;;  %v1899_v35 = vsub.f32 %v1835_v41, %v827_v34 }
 0x2b8   : > { %v1348_v33 = vpop.eup %1347 }
 0x2b9   : > { %v874_v36 = vmul.f32 1.442695, %v1899_v35  ;;  %898 = vadd.xlane.f32.xlu1 %v1348_v33 }
 0x2ba   : > { %v829_v38 = vpop.xlane.xlu0 %828 }
 0x2bb   : > { %1355 = vpow2.f32 %v874_v36  ;;  %v1903_v39 = vsub.f32 %v1839_v45, %v829_v38 }
 0x2bc   : > { %v1350_v37 = vpop.eup %1349 }
 0x2bd   : > { %v876_v40 = vmul.f32 1.442695, %v1903_v39  ;;  %900 = vadd.xlane.f32.xlu0 %v1350_v37 }
 0x2be   : > { %v831_v42 = vpop.xlane.xlu1 %830 }
 0x2bf   : > { %1357 = vpow2.f32 %v876_v40  ;;  %v1907_v43 = vsub.f32 %v1843_v51, %v831_v42 }
 0x2c0   : > { %v1352_v41 = vpop.eup %1351 }
 0x2c1   : > { %v878_v44 = vmul.f32 1.442695, %v1907_v43  ;;  %902 = vadd.xlane.f32.xlu1 %v1352_v41 }
 0x2c2   : > { %v833_v46 = vpop.xlane.xlu0 %832 }
 0x2c3   : > { %1359 = vpow2.f32 %v878_v44  ;;  %v1911_v47 = vsub.f32 %v1847_v55, %v833_v46 }
 0x2c4   : > { %v1354_v45 = vpop.eup %1353 }
 0x2c5   : > { %v880_v50 = vmul.f32 1.442695, %v1911_v47  ;;  %904 = vadd.xlane.f32.xlu0 %v1354_v45 }
 0x2c6   : > { %v835_v52 = vpop.xlane.xlu1 %834 }
 0x2c7   : > { %1361 = vpow2.f32 %v880_v50  ;;  %v1915_v53 = vsub.f32 %v1851_v59, %v835_v52 }
 0x2c8   : > { %v1356_v51 = vpop.eup %1355 }
 0x2c9   : > { %v882_v54 = vmul.f32 1.442695, %v1915_v53  ;;  %906 = vadd.xlane.f32.xlu1 %v1356_v51 }
 0x2ca   : > { %v837_v56 = vpop.xlane.xlu0 %836 }
 0x2cb   : > { %1363 = vpow2.f32 %v882_v54  ;;  %v1919_v57 = vsub.f32 %v1855_v63, %v837_v56 }
 0x2cc   : > { %v1358_v55 = vpop.eup %1357 }
 0x2cd   : > { %v884_v58 = vmul.f32 1.442695, %v1919_v57  ;;  %908 = vadd.xlane.f32.xlu0 %v1358_v55 }
 0x2ce   : > { %v839_v60 = vpop.xlane.xlu1 %838 }
 0x2cf   : > { %1365 = vpow2.f32 %v884_v58  ;;  %v1923_v61 = vsub.f32 %v1859_v2, %v839_v60 }
 0x2d0   : > { %v1360_v59 = vpop.eup %1359 }
 0x2d1   : > { %v886_v62 = vmul.f32 1.442695, %v1923_v61  ;;  %910 = vadd.xlane.f32.xlu1 %v1360_v59 }
 0x2d3   : > { %1367 = vpow2.f32 %v886_v62 }
 0x2d4   : > { %v1362_v0 = vpop.eup %1361 }
 0x2d5   : > { %912 = vadd.xlane.f32.xlu0 %v1362_v0 }
 0x2d8   : > { %v1364_v1 = vpop.eup %1363 }
 0x2d9   : > { %914 = vadd.xlane.f32.xlu1 %v1364_v1 }
 0x2dc   : > { %v1366_v63 = vpop.eup %1365 }
 0x2dd   : > { %916 = vadd.xlane.f32.xlu0 %v1366_v63 }
 0x2e0   : > { %v1368_v3 = vpop.eup %1367 }
 0x2e1   : > { %918 = vadd.xlane.f32.xlu1 %v1368_v3 }
 0x32e   : > { %v889_v6 = vpop.xlane.xlu0 %888 }
 0x32f   : > { %1369 = vlog2.f32 %v889_v6 }
 0x332   : > { %v891_v8 = vpop.xlane.xlu1 %890 }
 0x333   : > { %1371 = vlog2.f32 %v891_v8 }
 0x336   : > { %v893_v2 = vpop.xlane.xlu0 %892 }
 0x337   : > { %1373 = vlog2.f32 %v893_v2 }
 0x33a   : > { %v895_v49 = vpop.xlane.xlu1 %894 }
 0x33b   : > { %1375 = vlog2.f32 %v895_v49 }
 0x33c   : > { %v1370_v10 = vpop.eup %1369 }
 0x33d   : > { %v921_v11 = vmul.f32 0.6931472, %v1370_v10 }
 0x33e   : > { %v897_v12 = vpop.xlane.xlu0 %896 }
 0x33f   : > { %v952_v14 = vsub.f32 %v1863_v5, %v921_v11  ;;  %1377 = vlog2.f32 %v897_v12 }
 0x340   : > { %v1372_v15 = vpop.eup %1371 }
 0x341   : > { %968 = vst [vmem:[%s1928_s15] sm:$0xff] %v952_v14  ;;  %v923_v16 = vmul.f32 0.6931472, %v1372_v15 }
 0x342   : > { %v899_v18 = vpop.xlane.xlu1 %898 }
 0x343   : > { %v953_v13 = vsub.f32 %v1867_v48, %v923_v16  ;;  %1379 = vlog2.f32 %v899_v18 }
 0x344   : > { %v1374_v20 = vpop.eup %1373 }
 0x345   : > { %969 = vst [vmem:[%s1928_s15 + $0x8] sm:$0xff] %v953_v13  ;;  %v925_v17 = vmul.f32 0.6931472, %v1374_v20 }
 0x346   : > { %v901_v22 = vpop.xlane.xlu0 %900 }
 0x347   : > { %v954_v5 = vsub.f32 %v1871_v4, %v925_v17  ;;  %1381 = vlog2.f32 %v901_v22 }
 0x348   : > { %v1376_v21 = vpop.eup %1375 }
 0x349   : > { %970 = vst [vmem:[%s1928_s15 + $0x10] sm:$0xff] %v954_v5  ;;  %v927_v24 = vmul.f32 0.6931472, %v1376_v21 }
 0x34a   : > { %v903_v26 = vpop.xlane.xlu1 %902 }
 0x34b   : > { %v955_v25 = vsub.f32 %v1875_v7, %v927_v24  ;;  %1383 = vlog2.f32 %v903_v26 }
 0x34c   : > { %v1378_v28 = vpop.eup %1377 }
 0x34d   : > { %971 = vst [vmem:[%s1928_s15 + $0x18] sm:$0xff] %v955_v25  ;;  %v929_v48 = vmul.f32 0.6931472, %v1378_v28 }
 0x34e   : > { %v905_v30 = vpop.xlane.xlu0 %904 }
 0x34f   : > { %v956_v29 = vsub.f32 %v1879_v9, %v929_v48  ;;  %1385 = vlog2.f32 %v905_v30 }
 0x350   : > { %v1380_v32 = vpop.eup %1379 }
 0x351   : > { %972 = vst [vmem:[%s1928_s15 + $0x20] sm:$0xff] %v956_v29  ;;  %v931_v4 = vmul.f32 0.6931472, %v1380_v32 }
 0x352   : > { %v907_v34 = vpop.xlane.xlu1 %906 }
 0x353   : > { %v957_v33 = vsub.f32 %v1883_v19, %v931_v4  ;;  %1387 = vlog2.f32 %v907_v34 }
 0x354   : > { %v1382_v36 = vpop.eup %1381 }
 0x355   : > { %973 = vst [vmem:[%s1928_s15 + $0x28] sm:$0xff] %v957_v33  ;;  %v933_v7 = vmul.f32 0.6931472, %v1382_v36 }
 0x356   : > { %v909_v38 = vpop.xlane.xlu0 %908 }
 0x357   : > { %v958_v37 = vsub.f32 %v1887_v23, %v933_v7  ;;  %1389 = vlog2.f32 %v909_v38 }
 0x358   : > { %v1384_v40 = vpop.eup %1383 }
 0x359   : > { %974 = vst [vmem:[%s1928_s15 + $0x30] sm:$0xff] %v958_v37  ;;  %v935_v9 = vmul.f32 0.6931472, %v1384_v40 }
 0x35a   : > { %v911_v42 = vpop.xlane.xlu1 %910 }
 0x35b   : > { %v959_v41 = vsub.f32 %v1891_v27, %v935_v9  ;;  %1391 = vlog2.f32 %v911_v42 }
 0x35c   : > { %v1386_v44 = vpop.eup %1385 }
 0x35d   : > { %975 = vst [vmem:[%s1928_s15 + $0x38] sm:$0xff] %v959_v41  ;;  %v937_v19 = vmul.f32 0.6931472, %v1386_v44 }
 0x35e   : > { %v913_v46 = vpop.xlane.xlu0 %912 }
 0x35f   : > { %v960_v45 = vsub.f32 %v1895_v31, %v937_v19  ;;  %1393 = vlog2.f32 %v913_v46 }
 0x360   : > { %v1388_v50 = vpop.eup %1387 }
 0x361   : > { %976 = vst [vmem:[%s1928_s15 + $0x40] sm:$0xff] %v960_v45  ;;  %v939_v23 = vmul.f32 0.6931472, %v1388_v50 }
 0x362   : > { %v915_v52 = vpop.xlane.xlu1 %914 }
 0x363   : > { %v961_v51 = vsub.f32 %v1899_v35, %v939_v23  ;;  %1395 = vlog2.f32 %v915_v52 }
 0x364   : > { %v1390_v54 = vpop.eup %1389 }
 0x365   : > { %977 = vst [vmem:[%s1928_s15 + $0x48] sm:$0xff] %v961_v51  ;;  %v941_v27 = vmul.f32 0.6931472, %v1390_v54 }
 0x366   : > { %v917_v56 = vpop.xlane.xlu0 %916 }
 0x367   : > { %v962_v55 = vsub.f32 %v1903_v39, %v941_v27  ;;  %1397 = vlog2.f32 %v917_v56 }
 0x368   : > { %v1392_v58 = vpop.eup %1391 }
 0x369   : > { %978 = vst [vmem:[%s1928_s15 + $0x50] sm:$0xff] %v962_v55  ;;  %v943_v31 = vmul.f32 0.6931472, %v1392_v58 }
 0x36a   : > { %v919_v60 = vpop.xlane.xlu1 %918 }
 0x36b   : > { %v963_v59 = vsub.f32 %v1907_v43, %v943_v31  ;;  %1399 = vlog2.f32 %v919_v60 }
 0x36c   : > { %v1394_v35 = vpop.eup %1393 }
 0x36d   : > { %979 = vst [vmem:[%s1928_s15 + $0x58] sm:$0xff] %v963_v59  ;;  %v945_v62 = vmul.f32 0.6931472, %v1394_v35 }
 0x36f   : > { %v964_v0 = vsub.f32 %v1911_v47, %v945_v62 }
 0x370   : > { %v1396_v1 = vpop.eup %1395 }
 0x371   : > { %980 = vst [vmem:[%s1928_s15 + $0x60] sm:$0xff] %v964_v0  ;;  %v947_v39 = vmul.f32 0.6931472, %v1396_v1 }
 0x373   : > { %v965_v63 = vsub.f32 %v1915_v53, %v947_v39 }
 0x374   : > { %v1398_v3 = vpop.eup %1397 }
 0x375   : > { %981 = vst [vmem:[%s1928_s15 + $0x68] sm:$0xff] %v965_v63  ;;  %v949_v6 = vmul.f32 0.6931472, %v1398_v3 }
 0x377   : > { %v966_v43 = vsub.f32 %v1919_v57, %v949_v6 }
 0x378   : > { %v1400_v8 = vpop.eup %1399 }
 0x379   : > { %982 = vst [vmem:[%s1928_s15 + $0x70] sm:$0xff] %v966_v43  ;;  %v951_v2 = vmul.f32 0.6931472, %v1400_v8 }
 0x37b   : > { %v967_v47 = vsub.f32 %v1923_v61, %v951_v2 }
 0x37d   : > { %983 = vst [vmem:[%s1928_s15 + $0x78] sm:$0xff] %v967_v47 }
 0x37e   : > { %1494 = shalt.err (!%p1491_p9)
}
 0x37f   : > { %s1495_s24 = scalar_lea.hbm %s1964_s27, 2048  ;;  %s1499_s10 = scalar_lea.hbm %s2015_s5, 8192 }
 0x380   : > { %p1496_p12 = scmp.ne.s32.totalorder %s1964_s27, %s1495_s24  ;;  %p1500_p4 = scmp.lt.s32.totalorder %s1964_s27, %s2015_s5 }
 0x381   : > { %p1501_p8 = scmp.lt.s32.totalorder %s1499_s10, %s1495_s24 }
 0x382   : > { %p1497_p3 = pnand %p1496_p12, %p2033_p0 }
 0x383   : > { %p1502_p7 = por %p1501_p8, %p1500_p4 }
 0x384   : > { %p1498_p13 = pneg %p1497_p3 }
 0x386   : > { %p1503_p10 = pnand %p1502_p7, %p1498_p13 }
 0x388   : > { %1506 = shalt.err (!%p1503_p10)
}
 0x389   : > { %s1560_s16 = smov 128   ;;  %s1561_s30 = smov 8  }
 0x38a   : > { %1225 = dma.vmem_to_hbm [thread:$0]  (%p2033_p0), %s1966_s9, 2048, %s1964_s27, %s985_s23, %s1560_s16, %s1560_s16, %s1561_s30  }
 0x38b PF: > { %p1247_p1 = scmp.ge.s32.totalorder %s1549_s21, 2  ;;  %s1013_s11 = sand.u32 1, %s1537_s18  }
 0x38c   : > { %p2034_p2 = scmp.ne.s32.totalorder %s2022_s25, 0  ;;  %s1014_s13 = scalar_lea.sflag [#allocation4], %s1013_s11 }
 0x38e   : > { %p1239_p6 = pnand %p1247_p1, %p2034_p2 }
 0x390   : > { %p1240_p11 = pneg %p1239_p6 }
 0x392   : > { %1532 = dma.done.wait (%p1240_p11), %s1014_s13, 2048  }
 0x393   : > { %1534 = vsyncadd (%p1240_p11), %s1014_s13, 4294965248  ;;  %p19_p5 = scmp.ge.s32.totalorder %s1666_s17, 6   ;;  %s2035_s18 = smov %s1541_s19 }
 0x394   : > { %s2036_s19 = smov %s1545_s20  ;;  %s2037_s20 = smov %s1675_s28 }
 0x395   : > { %s2038_s21 = smov %s1666_s17  ;;  %21 = sbr.rel (!%p19_p5) target bundleno = 6 (0x6), region = 93 }
 0x39a   :  { %1019 = vsyncpa [#allocation3], 1 }
 0x39b   :  { %1021 = vsyncpa [#allocation3 + $0x1], 1 }
 0x39c   :  { %1022 = vsyncpa [#allocation6], 1 }
 0x39d   :  { %1023 = vsyncpa [#allocation4], 1 }
 0x39e   :  { %1025 = vsyncpa [#allocation4 + $0x1], 1 }

</bundles_post_ra>
